<compile_context>
chip_gen: v7x
topology: tpu7x:2x2x1
jax: 0.10.0
libtpu: 0.0.40
codegen_flags: <defaults>
</compile_context>

<pallas_src>
import functools

import jax
import jax.numpy as jnp
from jax.experimental import pallas as pl
from jax.experimental.pallas import tpu as pltpu

EPS = 1e-5

# Feature sizes.  Only weights are lane-padded; x stays 33-wide.
F_IN = 33
P_H1 = 512   # 500 -> 512
P_H2 = 128   # 100 -> 128
P_Z = 128    # 16  -> 128
P_OUT = 128  # 33  -> 128


def _round_up(n, m):
    return ((n + m - 1) // m) * m


def _pad2(a, rows, cols):
    r, c = a.shape
    return jnp.pad(a, ((0, rows - r), (0, cols - c)))


def _choose_tiling(batch, batch_tile):
    """Pick (tile, padded_batch): tile % 8 == 0, padded_batch % tile == 0,
    >= 2 grid steps when possible (v7x megacore), minimal wasted rows."""
    b8 = _round_up(max(batch, 8), 8)
    n_steps = max(2, pl.cdiv(b8, batch_tile))
    tile = max(8, _round_up(pl.cdiv(b8, n_steps), 8))
    b_pad = _round_up(b8, tile)
    return tile, b_pad


# ----------------------------- kernels -----------------------------


def _encoder_kernel(x_ref, s1_ref, t1_ref, w1_ref, b1_ref, w2_ref, b2_ref,
                    w3_ref, b3_ref, z_ref, mom_ref, *, tile, n_valid):
    # BN1 as per-feature f32 scale/shift (batch stats precomputed in wrapper).
    x = x_ref[...] * s1_ref[...] + t1_ref[...]                      # (tile, 33)
    h = jnp.dot(x.astype(jnp.bfloat16), w1_ref[...],
                preferred_element_type=jnp.float32) + b1_ref[...]
    h = jnp.maximum(h, 0.0)
    h = jnp.dot(h.astype(jnp.bfloat16), w2_ref[...],
                preferred_element_type=jnp.float32) + b2_ref[...]
    h = jnp.maximum(h, 0.0)
    z = jnp.dot(h.astype(jnp.bfloat16), w3_ref[...],
                preferred_element_type=jnp.float32) + b3_ref[...]
    z_ref[...] = z.astype(jnp.bfloat16)

    # f32 per-tile moments of the *valid* rows of z, so BN2 statistics can be
    # finished in the wrapper without an extra HBM pass over z.
    row = (pl.program_id(0) * tile
           + jax.lax.broadcasted_iota(jnp.int32, (tile, 1), 0))
    zv = jnp.where(row < n_valid, z, 0.0)
    mom_ref[0, 0:1, :] = jnp.sum(zv, axis=0, keepdims=True)
    mom_ref[0, 1:2, :] = jnp.sum(zv * zv, axis=0, keepdims=True)


def _decoder_kernel(z_ref, s2_ref, t2_ref, w4_ref, b4_ref, w5_ref, b5_ref,
                    w6_ref, b6_ref, o_ref):
    # BN2 as per-feature f32 scale/shift on bf16 z.
    z = z_ref[...].astype(jnp.float32) * s2_ref[...] + t2_ref[...]
    d = jnp.dot(z.astype(jnp.bfloat16), w4_ref[...],
                preferred_element_type=jnp.float32) + b4_ref[...]
    d = jnp.maximum(d, 0.0)
    d = jnp.dot(d.astype(jnp.bfloat16), w5_ref[...],
                preferred_element_type=jnp.float32) + b5_ref[...]
    d = jnp.maximum(d, 0.0)
    out = jnp.dot(d.astype(jnp.bfloat16), w6_ref[...],
                  preferred_element_type=jnp.float32) + b6_ref[...]
    o_ref[...] = jnp.tanh(out).astype(o_ref.dtype)


# ----------------------------- launcher -----------------------------


def _const_specs(arrs):
    # Full-array blocks with a constant index_map: stay VMEM-resident.
    return [pl.BlockSpec(a.shape, lambda i: (0, 0)) for a in arrs]


def autoencoder_forward(x, params, *, batch_tile=2048):
    """x: [B, 33] float32.  Returns [B, 33] bfloat16 (tanh output)."""
    B, F = x.shape
    assert F == F_IN
    x = x.astype(jnp.float32)

    tile, b_pad = _choose_tiling(B, batch_tile)
    n_steps = b_pad // tile
    x_p = jnp.pad(x, ((0, b_pad - B), (0, 0)))    # pad rows only, not lanes

    compiler_params = pltpu.CompilerParams(
        dimension_semantics=("parallel",),
        vmem_limit_bytes=32 * 1024 * 1024)

    # ---- BN1 (training-mode batch stats on x) -> per-feature scale/shift ----
    m1 = jnp.mean(x, axis=0, keepdims=True)
    v1 = jnp.var(x, axis=0, keepdims=True)                   # biased, as torch
    s1 = params["bn1_gamma"] * jax.lax.rsqrt(v1 + EPS)       # (1, 33)
    t1 = params["bn1_beta"] - m1 * s1                        # (1, 33)

    enc_consts = [
        s1, t1,
        _pad2(params["w1"], F_IN, P_H1).astype(jnp.bfloat16),
        _pad2(params["b1"], 1, P_H1),
        _pad2(params["w2"], P_H1, P_H2).astype(jnp.bfloat16),
        _pad2(params["b2"], 1, P_H2),
        _pad2(params["w3"], P_H2, P_Z).astype(jnp.bfloat16),
        _pad2(params["b3"], 1, P_Z),
    ]
    enc_cost = pl.CostEstimate(
        flops=2 * b_pad * (33 * 500 + 500 * 100 + 100 * 16),
        transcendentals=0,
        bytes_accessed=int(x_p.size * 4 + b_pad * P_Z * 2 + n_steps * 2 * P_Z * 4
                           + sum(a.size * a.dtype.itemsize for a in enc_consts)))

    z_pad, moments = pl.pallas_call(
        functools.partial(_encoder_kernel, tile=tile, n_valid=B),
        grid=(n_steps,),
        in_specs=[pl.BlockSpec((tile, F_IN), lambda i: (i, 0))]
                 + _const_specs(enc_consts),
        out_specs=(pl.BlockSpec((tile, P_Z), lambda i: (i, 0)),
                   pl.BlockSpec((1, 2, P_Z), lambda i: (i, 0, 0))),
        out_shape=(jax.ShapeDtypeStruct((b_pad, P_Z), jnp.bfloat16),
                   jax.ShapeDtypeStruct((n_steps, 2, P_Z), jnp.float32)),
        compiler_params=compiler_params,
        cost_estimate=enc_cost,
    )(x_p, *enc_consts)

    # ---- BN2 statistics from the in-kernel f32 moments (no z re-read) ----
    zsum = jnp.sum(moments[:, 0, :16], axis=0)
    zsq = jnp.sum(moments[:, 1, :16], axis=0)
    m2 = zsum / B
    v2 = jnp.maximum(zsq / B - m2 * m2, 0.0)                 # biased variance
    s2v = params["bn2_gamma"][0] * jax.lax.rsqrt(v2 + EPS)   # (16,)
    t2v = params["bn2_beta"][0] - m2 * s2v
    s2 = _pad2(s2v[None, :], 1, P_Z)
    t2 = _pad2(t2v[None, :], 1, P_Z)

    dec_consts = [
        s2, t2,
        _pad2(params["w4"], P_Z, P_H2).astype(jnp.bfloat16),
        _pad2(params["b4"], 1, P_H2),
        _pad2(params["w5"], P_H2, P_H1).astype(jnp.bfloat16),
        _pad2(params["b5"], 1, P_H1),
        _pad2(params["w6"], P_H1, P_OUT).astype(jnp.bfloat16),
        _pad2(params["b6"], 1, P_OUT),
    ]
    dec_cost = pl.CostEstimate(
        flops=2 * b_pad * (16 * 100 + 100 * 500 + 500 * 33),
        transcendentals=b_pad * P_OUT,
        bytes_accessed=int(b_pad * P_Z * 2 + b_pad * P_OUT * 2
                           + sum(a.size * a.dtype.itemsize for a in dec_consts)))

    out_pad = pl.pallas_call(
        _decoder_kernel,
        grid=(n_steps,),
        in_specs=[pl.BlockSpec((tile, P_Z), lambda i: (i, 0))]
                 + _const_specs(dec_consts),
        out_specs=pl.BlockSpec((tile, P_OUT), lambda i: (i, 0)),
        out_shape=jax.ShapeDtypeStruct((b_pad, P_OUT), jnp.bfloat16),
        compiler_params=compiler_params,
        cost_estimate=dec_cost,
    )(z_pad, *dec_consts)

    return out_pad[:B, :33]


# ----------------------------- params / reference -----------------------------


def init_params(key):
    """Deterministic synthetic parameters matching the module's shapes.
    Linear weights stored as (in, out); biases / BN params as (1, out) rows."""
    dims = [(33, 500), (500, 100), (100, 16), (16, 100), (100, 500), (500, 33)]
    params = {}
    keys = jax.random.split(key, 2 * len(dims))
    for i, (fin, fout) in enumerate(dims):
        bound = 1.0 / jnp.sqrt(fin)
        params[f"w{i+1}"] = jax.random.uniform(
            keys[2 * i], (fin, fout), jnp.float32, -bound, bound)
        params[f"b{i+1}"] = jax.random.uniform(
            keys[2 * i + 1], (1, fout), jnp.float32, -bound, bound)
    params["bn1_gamma"] = jnp.ones((1, 33), jnp.float32)
    params["bn1_beta"] = jnp.zeros((1, 33), jnp.float32)
    params["bn2_gamma"] = jnp.ones((1, 16), jnp.float32)
    params["bn2_beta"] = jnp.zeros((1, 16), jnp.float32)
    return params


def reference_forward(x, p):
    """Plain-JAX f32 reference with PyTorch training-mode BatchNorm semantics."""
    def bn(v, g, b):
        m = jnp.mean(v, axis=0, keepdims=True)
        var = jnp.var(v, axis=0, keepdims=True)
        return (v - m) / jnp.sqrt(var + EPS) * g + b

    h = bn(x, p["bn1_gamma"], p["bn1_beta"])
    h = jnp.maximum(h @ p["w1"] + p["b1"], 0.0)
    h = jnp.maximum(h @ p["w2"] + p["b2"], 0.0)
    z = h @ p["w3"] + p["b3"]
    d = bn(z, p["bn2_gamma"], p["bn2_beta"])
    d = jnp.maximum(d @ p["w4"] + p["b4"], 0.0)
    d = jnp.maximum(d @ p["w5"] + p["b5"], 0.0)
    return jnp.tanh(d @ p["w6"] + p["b6"])


if __name__ == "__main__":
    key = jax.random.PRNGKey(0)
    k_x, k_p = jax.random.split(key)

    B = 60  # not a multiple of the tile -> exercises valid-row masking of BN2 moments
    x = jax.random.normal(k_x, (B, 33), jnp.float32)
    params = init_params(k_p)

    out = jax.block_until_ready(autoencoder_forward(x, params))
    ref = reference_forward(x, params)

    assert out.shape == (B, 33), out.shape
    # bf16 MXU inputs / bf16 z and output (f32 accumulation, f32 BN) -> loose tol.
    max_err = float(jnp.max(jnp.abs(out.astype(jnp.float32) - ref)))
    assert max_err < 8e-2, f"mismatch vs reference: max abs err {max_err}"

    print("KERNEL_OK")
</pallas_src>

<mosaic_0001>
module attributes {stable_mosaic.version = 11 : i64} {
  func.func @_encoder_kernel(%arg0: i32, %arg1: memref<32x33xf32, #tpu.memory_space<vmem>>, %arg2: memref<1x33xf32, #tpu.memory_space<vmem>>, %arg3: memref<1x33xf32, #tpu.memory_space<vmem>>, %arg4: memref<33x512xbf16, #tpu.memory_space<vmem>>, %arg5: memref<1x512xf32, #tpu.memory_space<vmem>>, %arg6: memref<512x128xbf16, #tpu.memory_space<vmem>>, %arg7: memref<1x128xf32, #tpu.memory_space<vmem>>, %arg8: memref<128x128xbf16, #tpu.memory_space<vmem>>, %arg9: memref<1x128xf32, #tpu.memory_space<vmem>>, %arg10: memref<32x128xbf16, #tpu.memory_space<vmem>>, %arg11: memref<1x2x128xf32, #tpu.memory_space<vmem>>) attributes {dimension_semantics = [#tpu.dimension_semantics<parallel>], iteration_bounds = array<i64: 2>, scalar_prefetch = 0 : i64, scratch_operands = 0 : i64, tpu.core_type = #tpu.core_type<tc>, window_params = [{transform_indices = @transform_0, window_bounds = array<i64: 32, 33>}, {pipeline_mode = #tpu.pipeline_mode<synchronous>, transform_indices = @transform_1, window_bounds = array<i64: 1, 33>}, {pipeline_mode = #tpu.pipeline_mode<synchronous>, transform_indices = @transform_2, window_bounds = array<i64: 1, 33>}, {pipeline_mode = #tpu.pipeline_mode<synchronous>, transform_indices = @transform_3, window_bounds = array<i64: 33, 512>}, {pipeline_mode = #tpu.pipeline_mode<synchronous>, transform_indices = @transform_4, window_bounds = array<i64: 1, 512>}, {pipeline_mode = #tpu.pipeline_mode<synchronous>, transform_indices = @transform_5, window_bounds = array<i64: 512, 128>}, {pipeline_mode = #tpu.pipeline_mode<synchronous>, transform_indices = @transform_6, window_bounds = array<i64: 1, 128>}, {pipeline_mode = #tpu.pipeline_mode<synchronous>, transform_indices = @transform_7, window_bounds = array<i64: 128, 128>}, {pipeline_mode = #tpu.pipeline_mode<synchronous>, transform_indices = @transform_8, window_bounds = array<i64: 1, 128>}, {transform_indices = @transform_9, window_bounds = array<i64: 32, 128>}, {transform_indices = @transform_10, window_bounds = array<i64: 1, 2, 128>}]} {
    %c0 = arith.constant 0 : index
    %c0_0 = arith.constant 0 : index
    %0 = vector.load %arg1[%c0, %c0_0] : memref<32x33xf32, #tpu.memory_space<vmem>>, vector<32x33xf32>
    %c0_1 = arith.constant 0 : index
    %c0_2 = arith.constant 0 : index
    %1 = vector.load %arg2[%c0_1, %c0_2] : memref<1x33xf32, #tpu.memory_space<vmem>>, vector<1x33xf32>
    %2 = vector.broadcast %1 : vector<1x33xf32> to vector<32x33xf32>
    %3 = arith.mulf %0, %2 : vector<32x33xf32>
    %c0_3 = arith.constant 0 : index
    %c0_4 = arith.constant 0 : index
    %4 = vector.load %arg3[%c0_3, %c0_4] : memref<1x33xf32, #tpu.memory_space<vmem>>, vector<1x33xf32>
    %5 = vector.broadcast %4 : vector<1x33xf32> to vector<32x33xf32>
    %6 = arith.addf %3, %5 : vector<32x33xf32>
    %7 = arith.truncf %6 : vector<32x33xf32> to vector<32x33xbf16>
    %c0_5 = arith.constant 0 : index
    %c0_6 = arith.constant 0 : index
    %8 = vector.load %arg4[%c0_5, %c0_6] : memref<33x512xbf16, #tpu.memory_space<vmem>>, vector<33x512xbf16>
    %cst = arith.constant dense<0.000000e+00> : vector<32x512xf32>
    %9 = tpu.matmul %7, %8, %cst {dimension_numbers = #tpu.dot_dimension_numbers<[1], [0], [0], [1], [0, 0, 1, 1], [], []>} : vector<32x33xbf16>, vector<33x512xbf16>, vector<32x512xf32> -> vector<32x512xf32>
    %c0_7 = arith.constant 0 : index
    %c0_8 = arith.constant 0 : index
    %10 = vector.load %arg5[%c0_7, %c0_8] : memref<1x512xf32, #tpu.memory_space<vmem>>, vector<1x512xf32>
    %11 = vector.broadcast %10 : vector<1x512xf32> to vector<32x512xf32>
    %12 = arith.addf %9, %11 : vector<32x512xf32>
    %cst_9 = arith.constant 0.000000e+00 : f32
    %13 = vector.broadcast %cst_9 : f32 to vector<32x512xf32>
    %14 = arith.maximumf %12, %13 : vector<32x512xf32>
    %15 = arith.truncf %14 : vector<32x512xf32> to vector<32x512xbf16>
    %c0_10 = arith.constant 0 : index
    %c0_11 = arith.constant 0 : index
    %16 = vector.load %arg6[%c0_10, %c0_11] : memref<512x128xbf16, #tpu.memory_space<vmem>>, vector<512x128xbf16>
    %cst_12 = arith.constant dense<0.000000e+00> : vector<32x128xf32>
    %17 = tpu.matmul %15, %16, %cst_12 {dimension_numbers = #tpu.dot_dimension_numbers<[1], [0], [0], [1], [0, 0, 1, 1], [], []>} : vector<32x512xbf16>, vector<512x128xbf16>, vector<32x128xf32> -> vector<32x128xf32>
    %c0_13 = arith.constant 0 : index
    %c0_14 = arith.constant 0 : index
    %18 = vector.load %arg7[%c0_13, %c0_14] : memref<1x128xf32, #tpu.memory_space<vmem>>, vector<1x128xf32>
    %19 = vector.broadcast %18 : vector<1x128xf32> to vector<32x128xf32>
    %20 = arith.addf %17, %19 : vector<32x128xf32>
    %cst_15 = arith.constant 0.000000e+00 : f32
    %21 = vector.broadcast %cst_15 : f32 to vector<32x128xf32>
    %22 = arith.maximumf %20, %21 : vector<32x128xf32>
    %23 = arith.truncf %22 : vector<32x128xf32> to vector<32x128xbf16>
    %c0_16 = arith.constant 0 : index
    %c0_17 = arith.constant 0 : index
    %24 = vector.load %arg8[%c0_16, %c0_17] : memref<128x128xbf16, #tpu.memory_space<vmem>>, vector<128x128xbf16>
    %cst_18 = arith.constant dense<0.000000e+00> : vector<32x128xf32>
    %25 = tpu.matmul %23, %24, %cst_18 {dimension_numbers = #tpu.dot_dimension_numbers<[1], [0], [0], [1], [0, 0, 1, 1], [], []>} : vector<32x128xbf16>, vector<128x128xbf16>, vector<32x128xf32> -> vector<32x128xf32>
    %c0_19 = arith.constant 0 : index
    %c0_20 = arith.constant 0 : index
    %26 = vector.load %arg9[%c0_19, %c0_20] : memref<1x128xf32, #tpu.memory_space<vmem>>, vector<1x128xf32>
    %27 = vector.broadcast %26 : vector<1x128xf32> to vector<32x128xf32>
    %28 = arith.addf %25, %27 : vector<32x128xf32>
    %29 = arith.truncf %28 : vector<32x128xf32> to vector<32x128xbf16>
    %c0_21 = arith.constant 0 : index
    %c0_22 = arith.constant 0 : index
    %30 = vector.load %arg10[%c0_21, %c0_22] : memref<32x128xbf16, #tpu.memory_space<vmem>>, vector<32x128xbf16>
    tpu.vector_store %arg10[%c0_21, %c0_22], %29 {strides = array<i32>} : memref<32x128xbf16, #tpu.memory_space<vmem>>, vector<32x128xbf16>,
    %c32_i32 = arith.constant 32 : i32
    %31 = arith.muli %arg0, %c32_i32 : i32
    %32 = tpu.iota {dimensions = array<i32: 0>} : vector<32x1xi32>
    %33 = vector.broadcast %31 : i32 to vector<32x1xi32>
    %34 = arith.addi %33, %32 : vector<32x1xi32>
    %c60_i32 = arith.constant 60 : i32
    %35 = vector.broadcast %c60_i32 : i32 to vector<32x1xi32>
    %36 = arith.cmpi slt, %34, %35 : vector<32x1xi32>
    %cst_23 = arith.constant 0.000000e+00 : f32
    %37 = vector.shape_cast %36 : vector<32x1xi1> to vector<32x1xi1>
    %38 = vector.broadcast %37 : vector<32x1xi1> to vector<32x128xi1>
    %39 = vector.broadcast %cst_23 : f32 to vector<32x128xf32>
    %40 = arith.select %38, %28, %39 : vector<32x128xi1>, vector<32x128xf32>
    %cst_24 = arith.constant dense<0.000000e+00> : vector<128xf32>
    %41 = vector.multi_reduction <add>, %40, %cst_24 [0] : vector<32x128xf32> to vector<128xf32>
    %42 = vector.shape_cast %41 : vector<128xf32> to vector<1x128xf32>
    %c0_25 = arith.constant 0 : index
    %c0_26 = arith.constant 0 : index
    %c0_27 = arith.constant 0 : index
    %43 = vector.load %arg11[%c0_25, %c0_26, %c0_27] : memref<1x2x128xf32, #tpu.memory_space<vmem>>, vector<1x1x128xf32>
    %44 = vector.shape_cast %43 : vector<1x1x128xf32> to vector<1x128xf32>
    %45 = vector.shape_cast %42 : vector<1x128xf32> to vector<1x1x128xf32>
    tpu.vector_store %arg11[%c0_25, %c0_26, %c0_27], %45 {strides = array<i32>} : memref<1x2x128xf32, #tpu.memory_space<vmem>>, vector<1x1x128xf32>,
    %46 = arith.mulf %40, %40 : vector<32x128xf32>
    %cst_28 = arith.constant dense<0.000000e+00> : vector<128xf32>
    %47 = vector.multi_reduction <add>, %46, %cst_28 [0] : vector<32x128xf32> to vector<128xf32>
    %48 = vector.shape_cast %47 : vector<128xf32> to vector<1x128xf32>
    %c0_29 = arith.constant 0 : index
    %c1 = arith.constant 1 : index
    %c0_30 = arith.constant 0 : index
    %49 = vector.load %arg11[%c0_29, %c1, %c0_30] : memref<1x2x128xf32, #tpu.memory_space<vmem>>, vector<1x1x128xf32>
    %50 = vector.shape_cast %49 : vector<1x1x128xf32> to vector<1x128xf32>
    %51 = vector.shape_cast %48 : vector<1x128xf32> to vector<1x1x128xf32>
    tpu.vector_store %arg11[%c0_29, %c1, %c0_30], %51 {strides = array<i32>} : memref<1x2x128xf32, #tpu.memory_space<vmem>>, vector<1x1x128xf32>,
    return
  }
  func.func @transform_0(%arg0: i32) -> (i32, i32) {
    %c0_i32 = arith.constant 0 : i32
    %c0_i32_0 = arith.constant 0 : i32
    return %arg0, %c0_i32 : i32, i32
  }
  func.func @transform_1(%arg0: i32) -> (i32, i32) {
    %c0_i32 = arith.constant 0 : i32
    %c0_i32_0 = arith.constant 0 : i32
    %c0_i32_1 = arith.constant 0 : i32
    return %c0_i32, %c0_i32_0 : i32, i32
  }
  func.func @transform_2(%arg0: i32) -> (i32, i32) {
    %c0_i32 = arith.constant 0 : i32
    %c0_i32_0 = arith.constant 0 : i32
    %c0_i32_1 = arith.constant 0 : i32
    return %c0_i32, %c0_i32_0 : i32, i32
  }
  func.func @transform_3(%arg0: i32) -> (i32, i32) {
    %c0_i32 = arith.constant 0 : i32
    %c0_i32_0 = arith.constant 0 : i32
    %c0_i32_1 = arith.constant 0 : i32
    return %c0_i32, %c0_i32_0 : i32, i32
  }
  func.func @transform_4(%arg0: i32) -> (i32, i32) {
    %c0_i32 = arith.constant 0 : i32
    %c0_i32_0 = arith.constant 0 : i32
    %c0_i32_1 = arith.constant 0 : i32
    return %c0_i32, %c0_i32_0 : i32, i32
  }
  func.func @transform_5(%arg0: i32) -> (i32, i32) {
    %c0_i32 = arith.constant 0 : i32
    %c0_i32_0 = arith.constant 0 : i32
    %c0_i32_1 = arith.constant 0 : i32
    return %c0_i32, %c0_i32_0 : i32, i32
  }
  func.func @transform_6(%arg0: i32) -> (i32, i32) {
    %c0_i32 = arith.constant 0 : i32
    %c0_i32_0 = arith.constant 0 : i32
    %c0_i32_1 = arith.constant 0 : i32
    return %c0_i32, %c0_i32_0 : i32, i32
  }
  func.func @transform_7(%arg0: i32) -> (i32, i32) {
    %c0_i32 = arith.constant 0 : i32
    %c0_i32_0 = arith.constant 0 : i32
    %c0_i32_1 = arith.constant 0 : i32
    return %c0_i32, %c0_i32_0 : i32, i32
  }
  func.func @transform_8(%arg0: i32) -> (i32, i32) {
    %c0_i32 = arith.constant 0 : i32
    %c0_i32_0 = arith.constant 0 : i32
    %c0_i32_1 = arith.constant 0 : i32
    return %c0_i32, %c0_i32_0 : i32, i32
  }
  func.func @transform_9(%arg0: i32) -> (i32, i32) {
    %c0_i32 = arith.constant 0 : i32
    %c0_i32_0 = arith.constant 0 : i32
    return %arg0, %c0_i32 : i32, i32
  }
  func.func @transform_10(%arg0: i32) -> (i32, i32, i32) {
    %c0_i32 = arith.constant 0 : i32
    %c0_i32_0 = arith.constant 0 : i32
    %c0_i32_1 = arith.constant 0 : i32
    return %arg0, %c0_i32, %c0_i32_0 : i32, i32, i32
  }
}

</mosaic_0001>

<bundles_post_ra>
// kernel: tpu_custom_call.1
= control target key start
LH: loop header
LB: loop body
LE: loop exit
PB: predicated region body
PF: predicated region fallthrough
CT: control target
= control target key end

     0   :  { %16 = vsyncpa [#allocation3], 0  ;;  %s2183_s0 = inlined_call_operand.vmem [shape: f32[64,33], index: 0, kind: input, shape index: {}]   ;;  %s2184_s1 = inlined_call_operand.vmem [shape: f32[1,33], index: 1, kind: input, shape index: {}]   ;;  %s2185_s2 = inlined_call_operand.vmem [shape: f32[1,33], index: 2, kind: input, shape index: {}]   ;;  %s2186_s3 = inlined_call_operand.vmem [shape: bf16[33,512], index: 3, kind: input, shape index: {}]   ;;  %s2187_s4 = inlined_call_operand.vmem [shape: f32[1,512], index: 4, kind: input, shape index: {}]   ;;  %s2188_s5 = inlined_call_operand.hbm [shape: bf16[512,128], index: 5, kind: input, shape index: {}]   ;;  %s2189_s6 = inlined_call_operand.vmem [shape: f32[1,128], index: 6, kind: input, shape index: {}]   ;;  %s2190_s7 = inlined_call_operand.hbm [shape: bf16[128,128], index: 7, kind: input, shape index: {}]   ;;  %s2191_s8 = inlined_call_operand.vmem [shape: f32[1,128], index: 8, kind: input, shape index: {}]   ;;  %s2192_s9 = inlined_call_operand.hbm [shape: bf16[64,128], index: 9, kind: output, shape index: {0}]   ;;  %s2193_s10 = inlined_call_operand.hbm [shape: f32[2,2,128], index: 10, kind: output, shape index: {1}]  }
   0x1   :  { %17 = vsyncpa [#allocation6], 0 }
   0x2   :  { %18 = vsyncpa [#allocation4], 0 }
   0x3   :  { %20 = vsyncpa [#allocation4 + $0x1], 0 }
   0x4   :  { %21 = vsyncpa [#allocation9], 0 }
   0x5   :  { %23 = vsyncpa [#allocation9 + $0x1], 0  ;;  %s1907_s13 = smov 0   ;;  %s1909_s14 = smov 0  }
   0x6   :  { %s1911_s15 = smov 0   ;;  %s1913_s16 = smov 0  }
   0x7 LB: > { %2201 = sst [smem:[#allocation14_spill]] %s1837_s15  ;;  %s1928_s17 = sadd.s32 4294967295, %s1841_s16   ;;  %s1841_s16 = sphi %s1913_s16, %s2217_s16   ;;  %s1837_s15 = sphi %s1911_s15, %s2219_s15   ;;  %s1833_s14 = sphi %s1909_s14, %s2221_s14   ;;  %s1829_s13 = sphi %s1907_s13, %s2220_s13  }
   0x8   : > { %s1371_s18 = sadd.s32 4294967294, %s1841_s16   ;;  %s1932_s19 = sadd.s32 1, %s1841_s16  }
   0x9   : > { %2202 = sst [smem:[#allocation15_spill]] %s1932_s19  ;;  %s230_s20 = sadd.s32 1, %s1837_s15 }
   0xa   : > { %s227_s21 = ssub.s32 %s1841_s16, %s1932_s19  ;;  %p240_p0 = scmp.ne.s32.totalorder %s1837_s15, %s1833_s14 }
   0xb   : > { %p228_p1 = scmp.eq.s32.totalorder %s227_s21, 0  ;;  %p241_p2 = scmp.eq.s32.totalorder %s1928_s17, 1 }
   0xc   : > { %p246_p3 = scmp.ne.s32.totalorder %s1833_s14, %s1829_s13  ;;  %p247_p4 = scmp.eq.s32.totalorder %s1371_s18, 1 }
   0xd   : > { %s1943_s22 = scalar_select %p228_p1, %s1837_s15, %s230_s20  }
   0xe   : > { %p1945_p5 = por %p241_p2, %p240_p0  ;;  %p1949_p6 = por %p247_p4, %p246_p3 }
   0xf   : > { %2203 = sst [smem:[#allocation16_spill]] %s1943_s22  ;;  %p1372_p7 = scmp.ge.s32.totalorder %s1841_s16, 1 }
  0x10   : > { %s2204_s23 = scalar_select %p1945_p5, 1, 0 }
  0x11   : > { %s2205_s24 = scalar_select %p1949_p6, 1, 0 }
  0x12   : > { %p280_p8 = scmp.lt.s32.totalorder %s1841_s16, 3  ;;  %p2194_p9 = scmp.eq.s32.totalorder %s1928_s17, 0 }
  0x13   : > { %2206 = sst [smem:[#allocation17_spill]] %s2205_s24  ;;  %s1843_s26 = smov [#allocation2]  }
  0x14   : > { %p1956_p10 = pnand %p1372_p7, %p280_p8  ;;  %s304_s27 = sshll.u32 %s1843_s26, 4  ;;  %s305_s27 = int_to_ptr.vmem [resolvable:$true] %s304_s27 }
  0x15   : > { %s1844_s29 = smov [#allocation5]   ;;  %s1683_s18 = scalar_lea.hbm %s2188_s5, 4096 }
  0x16   : > { %s2207_s25 = scalar_select %p1956_p10, 1, 0 }
  0x17   : > { %p1569_p11 = pneg %p1956_p10  ;;  %s320_s30 = sshll.u32 %s1844_s29, 4  ;;  %s1968_s30 = int_to_ptr.vmem [resolvable:$true] %s320_s30 }
  0x18   : > { %p1684_p13 = scmp.ne.s32.totalorder %s2188_s5, %s1683_s18  ;;  %p1690_p3 = scmp.lt.u32.totalorder %s1683_s18, %s2188_s5 }
  0x19   : > { %p1964_p12 = pnand %p2194_p9, %p1569_p11 }
  0x1b   : > { %p1685_p0 = pneg %p1964_p12 }
  0x1d   : > { %p1686_p1 = pnand %p1685_p0, %p1684_p13 }
  0x1f   : > { %p1687_p2 = pneg %p1686_p1 }
  0x21   : > { %p1692_p4 = pnand %p1690_p3, %p1687_p2 }
  0x23   : > { %1695 = shalt.err (!%p1692_p4)
}
  0x24   : > { %s1696_s29 = scalar_lea.vmem %s305_s27, 4096  ;;  %p1704_p9 = scmp.lt.s32.totalorder %s305_s27, %s305_s27 }
  0x25   : > { %p1697_p7 = scmp.ne.s32.totalorder %s305_s27, %s1696_s29  ;;  %p1705_p6 = scmp.lt.s32.totalorder %s1696_s29, %s1696_s29 }
  0x27   : > { %p1699_p8 = pnand %p1697_p7, %p1685_p0  ;;  %p1706_p5 = por %p1705_p6, %p1704_p9 }
  0x29   : > { %p1700_p11 = pneg %p1699_p8 }
  0x2b   : > { %p1707_p10 = pnand %p1706_p5, %p1700_p11 }
  0x2d   : > { %1710 = shalt.err (!%p1707_p10)
}
  0x2e   : > { %s1845_s11 = smov 64   ;;  %s1846_s12 = smov 4  }
  0x2f   : > { %1572 = dma.hbm_to_vmem [thread:$0]  (!%p1964_p12), %s2188_s5, 4096, %s305_s27, [#allocation3], %s1845_s11, %s1845_s11, %s1846_s12  }
  0x30   : > { %s1711_s26 = scalar_lea.hbm %s2190_s7, 1024 }
  0x31   : > { %p1712_p13 = scmp.ne.s32.totalorder %s2190_s7, %s1711_s26  ;;  %p1718_p9 = scmp.lt.u32.totalorder %s1711_s26, %s2190_s7 }
  0x33   : > { %p1714_p5 = pnand %p1712_p13, %p1685_p0 }
  0x35   : > { %p1715_p6 = pneg %p1714_p5 }
  0x37   : > { %p1720_p10 = pnand %p1718_p9, %p1715_p6 }
  0x39   : > { %1723 = shalt.err (!%p1720_p10)
}
  0x3a   : > { %s1724_s27 = scalar_lea.vmem %s1968_s30, 1024  ;;  %p1732_p4 = scmp.lt.s32.totalorder %s1968_s30, %s1968_s30 }
  0x3b   : > { %p1725_p1 = scmp.ne.s32.totalorder %s1968_s30, %s1724_s27  ;;  %p1733_p7 = scmp.lt.s32.totalorder %s1724_s27, %s1724_s27 }
  0x3d   : > { %p1727_p2 = pnand %p1725_p1, %p1685_p0  ;;  %p1734_p8 = por %p1733_p7, %p1732_p4 }
  0x3f   : > { %p1728_p3 = pneg %p1727_p2 }
  0x41   : > { %p1735_p11 = pnand %p1734_p8, %p1728_p3 }
  0x43   : > { %1738 = shalt.err (!%p1735_p11)
}
  0x44   : > { %1575 = dma.hbm_to_vmem [thread:$0]  (!%p1964_p12), %s2190_s7, 1024, %s1968_s30, [#allocation6], %s1845_s11, %s1845_s11, %s1846_s12  }
  0x45   : > { %p2209_p13 = scmp.ne.s32.totalorder %s2207_s25, 0 }
  0x46   : > { %p2210_p5 = scmp.eq.s32.totalorder (!%p2209_p13), %s1928_s17, 0 }
  0x47   : > { %348 = sbr.rel (%p2209_p13) target bundleno = 829 (0x33d), region = 56 }
  0x4e   : > { %1812 = dma.done.wait (%p2210_p5), [#allocation3], 4096   ;;  %p2211_p0 = pmov %p2210_p5 }
  0x50   : > { %1814 = vsyncadd (%p2211_p0), [#allocation3], 4294963200  ;;  %p2212_p6 = pmov %p2211_p0 }
  0x51   : > { %p2213_p9 = pmov %p2211_p0 }
  0x52   : > { %1816 = dma.done.wait (%p2212_p6), [#allocation6], 1024  }
  0x53   : > { %1818 = vsyncadd (%p2213_p9), [#allocation6], 4294966272  ;;  %s1381_s24 = sshll.u32 %s1928_s17, 2  ;;  %v1847_v0 = vmov 0   ;;  %vm520_vm0 = vcmask 1040384   ;;  %v1643_v23 = vld [vmem:[#allocation2 + $0x40] sm:$0xff]  }
  0x54   : > { %567 = vmatprep.mubr.bf16.mxu1 %v1847_v0  ;;  %p396_p12 = scmp.lt.s32.totalorder %s1381_s24, 7  ;;  %v1627_v1 = vld [vmem:[%s2186_s3 + $0x4] ss:$16 sps:$4 sm:$0xff]   ;;  %v1629_v2 = vld [vmem:[%s2186_s3] ss:$16 sps:$4 sm:$0xff]   ;;  %v522_v3 = vsel %vm520_vm0, 65535, %v1847_v0  ;;  %1471 = vmatprep.subr.bf16.mxu0 %v1643_v23 }
  0x55   : > { %535 = vmatprep.subr.bf16.mxu1 %v1627_v1  ;;  %v1630_v4 = vld [vmem:[%s2186_s3 + $0x24] ss:$16 sps:$4 sm:$0xff]   ;;  %v1632_v5 = vld [vmem:[%s2186_s3 + $0x20] ss:$16 sps:$4 sm:$0xff]   ;;  %v1637_v18 = vld [vmem:[%s2186_s3 + $0xc] ss:$16 sps:$4 sm:$0xff]  }
  0x56   : > { %s2223_s24 = smov (!%p396_p12, %s1381_s24), 7  ;;  %v439_v6 = vld [vmem:[%s2186_s3 + $0x40] sm:$0x11]  ;;  %536 = vmatpush1.bf16.msra.mxu1 %v1629_v2  ;;  %v440_v22 = vld [vmem:[%s2186_s3 + $0x48] sm:$0x11]  ;;  %v1644_v25 = vld [vmem:[#allocation2] sm:$0xff]  }
  0x57   : > { %s1382_s25 = sshll.u32 %s2223_s24, 3  ;;  %v1394_v7 = vcombine.high %v439_v6, %v439_v6  ;;  %v1393_v8 = vcombine.low %v439_v6, %v439_v6  ;;  %v1383_v11 = vld [vmem:[%s2184_s1] ss:$0 sm:$0xff]  ;;  %537 = vmatprep.subr.bf16.mxu1 %v1630_v4  ;;  %v1635_v24 = vld [vmem:[%s2186_s3 + $0x8] ss:$16 sps:$4 sm:$0xff]   ;;  %vm513_vm1 = vcmask 269312   ;;  %1472 = vmatpush3.bf16.msra.mxu0 %v1644_v25  ;;  %v1396_v31 = vcombine.high %v440_v22, %v440_v22 }
  0x58   : > { %s399_s22 = scalar_lea.vmem %s2183_s0, %s1382_s25  ;;  %v1384_v14 = vld [vmem:[%s2185_s2] ss:$0 sm:$0xff]  ;;  %v1645_v29 = vld [vmem:[#allocation2 + $0x48] sm:$0xff]   ;;  %v1395_v37 = vcombine.low %v440_v22, %v440_v22  ;;  %v1649_v40 = vld [vmem:[#allocation2 + $0x58] sm:$0xff]   ;;  %v443_v4 = vlaneseq  ;;  %s1447_s30 = sshll.u32 %s1928_s17, 5 }
  0x59   : > { %v403_v9 = vld [vmem:[%s399_s22] sm:$0xff]  ;;  %v404_v10 = vld [vmem:[%s399_s22 + $0x8] sm:$0xff]  ;;  %v527_v15 = vand.u32 %v1394_v7, %v522_v3  ;;  %v524_v19 = vand.u32 %v1393_v8, %v522_v3  ;;  %v405_v20 = vld [vmem:[%s399_s22 + $0x10] sm:$0xff]  ;;  %1473 = vmatprep.subr.bf16.mxu0 %v1645_v29  ;;  %v533_v38 = vand.u32 %v1396_v31, %v522_v3  ;;  %s2092_s11 = sand.u32 1, %s1833_s14   ;;  %s1459_s29 = sshll.u32 %s1928_s17, 8 }
  0x5a   : > { %v414_v12 = vmul.f32 %v1383_v11, %v403_v9  ;;  %v415_v13 = vmul.f32 %v1383_v11, %v404_v10  ;;  %538 = vmatpush1.bf16.msra.mxu1 %v1632_v5  ;;  %v406_v21 = vld [vmem:[%s399_s22 + $0x18] sm:$0xff]  ;;  %v416_v27 = vmul.f32 %v1383_v11, %v405_v20  ;;  %v1647_v33 = vld [vmem:[#allocation2 + $0x50] sm:$0xff]   ;;  %v530_v42 = vand.u32 %v1395_v37, %v522_v3  ;;  %v1650_v43 = vld [vmem:[#allocation2 + $0x18] sm:$0xff]   ;;  %s1379_s12 = sshll.u32 %s2092_s11, 4  ;;  %s2108_s15 = scalar_lea.hbm %s2192_s9, %s1459_s29 }
  0x5b   : > { %539 = vmatprep.subr.bf16.mxu1 %v527_v15  ;;  %v417_v28 = vmul.f32 %v1383_v11, %v406_v21  ;;  %v1640_v30 = vld [vmem:[%s2186_s3 + $0x2c] ss:$16 sps:$4 sm:$0xff]   ;;  %v1638_v36 = vld [vmem:[%s2186_s3 + $0x28] ss:$16 sps:$4 sm:$0xff]   ;;  %v1648_v39 = vld [vmem:[#allocation2 + $0x10] sm:$0xff]   ;;  %v2076_v5 = vshrl.u32 %v443_v4, 7 }
  0x5c   : > { %v425_v16 = vadd.f32 %v1384_v14, %v414_v12  ;;  %v426_v17 = vadd.f32 %v1384_v14, %v415_v13  ;;  %v1646_v32 = vld [vmem:[#allocation2 + $0x8] sm:$0xff]   ;;  %v427_v34 = vadd.f32 %v1384_v14, %v416_v27  ;;  %v1652_v44 = vld [vmem:[#allocation2 + $0xc0] sm:$0xff]   ;;  %v1659_v52 = vld [vmem:[#allocation2 + $0x70] sm:$0xff]   ;;  %s387_s21 = scalar_lea.vmem [#allocation7], %s1379_s12  ;;  %s1224_s19 = scalar_lea.sflag [#allocation4], %s2092_s11 }
  0x5d   : > { %v428_v35 = vadd.f32 %v1384_v14, %v417_v28  ;;  %1474 = vmatpush3.bf16.msra.mxu0 %v1646_v32  ;;  %v1651_v45 = vld [vmem:[#allocation2 + $0x60] sm:$0xff]   ;;  %v1655_v47 = vld [vmem:[#allocation2 + $0x68] sm:$0xff]   ;;  %v1660_v53 = vld [vmem:[#allocation2 + $0xd0] sm:$0xff]   ;;  %v445_v6 = vsub.s32 0, %v2076_v5  ;;  %v449_v8 = vsub.s32 1, %v2076_v5  ;;  %v453_v28 = vsub.s32 2, %v2076_v5 }
  0x5e   : > { %v429_v26 = vpack.c.bf16 %v426_v17, %v425_v16  ;;  %540 = vmatpush1.bf16.msra.mxu1 %v524_v19  ;;  %1475 = vmatprep.subr.bf16.mxu0 %v1647_v33  ;;  %v1653_v46 = vld [vmem:[#allocation2 + $0x20] sm:$0xff]   ;;  %v1656_v49 = vld [vmem:[#allocation2 + $0xc8] sm:$0xff]   ;;  %v1661_v54 = vld [vmem:[#allocation2 + $0x30] sm:$0xff]   ;;  %v457_v31 = vsub.s32 3, %v2076_v5  ;;  %s1242_s26 = sshll.u32 %s387_s21, 4  ;;  %p2214_p1 = scmp.ne.s32.totalorder %s2204_s23, 0  ;;  %s2103_s26 = int_to_ptr.vmem [resolvable:$true] %s1242_s26 }
  0x5f   : > { %588 = vmatprep.subr.bf16.mxu1 %v1637_v18  ;;  %v430_v41 = vpack.c.bf16 %v428_v35, %v427_v34  ;;  %v1654_v48 = vld [vmem:[#allocation2 + $0x80] sm:$0xff]   ;;  %v1657_v50 = vld [vmem:[#allocation2 + $0x28] sm:$0xff]   ;;  %v1662_v55 = vld [vmem:[#allocation2 + $0x90] sm:$0xff]   ;;  %s1739_s24 = scalar_lea.vmem %s2103_s26, 256  ;;  %s1848_s25 = smov [#allocation7]  }
  0x60   : > { %v1658_v51 = vld [vmem:[#allocation2 + $0x88] sm:$0xff]   ;;  %v1663_v56 = vld [vmem:[#allocation2 + $0x78] sm:$0xff]   ;;  %v1667_v60 = vld [vmem:[#allocation2 + $0xe0] sm:$0xff]   ;;  %p1740_p10 = scmp.ne.s32.totalorder %s2103_s26, %s1739_s24  ;;  %s1743_s28 = sshll.u32 %s1848_s25, 4  ;;  %s1744_s28 = int_to_ptr.vmem [resolvable:$false] %s1743_s28 }
  0x61   : > { %1397 = vmatmul.mubr.msk.bf16.vlgmr.msra.gmra.mrb[0].mxu1 %vm513_vm1, %v429_v26  ;;  %1476 = vmatpush3.bf16.msra.mxu0 %v1648_v39  ;;  %v1664_v57 = vld [vmem:[#allocation2 + $0xd8] sm:$0xff]   ;;  %v1668_v61 = vld [vmem:[#allocation2 + $0xa0] sm:$0xff]   ;;  %v1669_v62 = vld [vmem:[#allocation2 + $0xe8] sm:$0xff]   ;;  %s1745_s12 = scalar_lea.vmem %s1744_s28, 512  ;;  %p1746_p4 = scmp.lt.s32.totalorder %s2103_s26, %s1744_s28 }
  0x62   : > { %589 = vmatpush1.bf16.msra.mxu1 %v1635_v24  ;;  %577 = vmatprep.mubr.bf16.mxu1 %v1847_v0  ;;  %v1665_v58 = vld [vmem:[#allocation2 + $0x38] sm:$0xff]   ;;  %v1670_v63 = vld [vmem:[#allocation2 + $0xa8] sm:$0xff]   ;;  %v1672_v1 = vld [vmem:[#allocation2 + $0xb0] sm:$0xff]   ;;  %p1741_p2 = pnand %p1740_p10, %p2214_p1  ;;  %p1747_p7 = scmp.lt.s32.totalorder %s1745_s12, %s1739_s24 }
  0x63   : > { %590 = vmatprep.subr.bf16.mxu1 %v1640_v30  ;;  %1477 = vmatprep.subr.bf16.mxu0 %v1649_v40  ;;  %v1666_v59 = vld [vmem:[#allocation2 + $0x98] sm:$0xff]   ;;  %v441_v7 = vld [vmem:[%s2187_s4] sm:$0xf] }
  0x64   : > { %v1673_v2 = vld [vmem:[#allocation2 + $0xf8] sm:$0xff]   ;;  %v446_v9 = vrot.slane %v441_v7, %v445_v6  ;;  %v450_v10 = vrot.slane %v441_v7, %v449_v8  ;;  %v454_v37 = vrot.slane %v441_v7, %v453_v28  ;;  %v458_v40 = vrot.slane %v441_v7, %v457_v31  ;;  %v1675_v8 = vld [vmem:[#allocation5] sm:$0xff]   ;;  %v1401_v28 = vld [vmem:[%s2189_s6] ss:$0 sm:$0xff]  ;;  %p1742_p3 = pneg %p1741_p2  ;;  %p1748_p8 = por %p1747_p7, %p1746_p4 }
  0x65   : > { %1478 = vmatpush3.bf16.msra.mxu0 %v1650_v43  ;;  %v1674_v3 = vld [vmem:[#allocation2 + $0xb8] sm:$0xff]  }
  0x66   : > { %591 = vmatpush1.bf16.msra.mxu1 %v1638_v36  ;;  %1479 = vmatprep.subr.bf16.mxu0 %v1651_v45  ;;  %p1749_p11 = pnand %p1748_p8, %p1742_p3 }
  0x67   : > { %592 = vmatprep.subr.bf16.mxu1 %v533_v38 }
  0x69   : > { %1398 = vmatmul.mubr.msk.bf16.gmra.mrb[4].mxu1 %vm513_vm1, %v430_v41  ;;  %1480 = vmatpush3.bf16.msra.mxu0 %v1653_v46 }
  0x6a   : > { %593 = vmatpush1.bf16.msra.mxu1 %v530_v42  ;;  %620 = vmatprep.mubr.bf16.mxu1 %v1847_v0 }
  0x6b   : > { %1499 = vmatprep.subr.bf16.mxu1 %v1652_v44  ;;  %1481 = vmatprep.subr.bf16.mxu0 %v1655_v47 }
  0x6d   : > { %1482 = vmatpush3.bf16.msra.mxu0 %v1657_v50 }
  0x6e   : > { %1483 = vmatprep.subr.bf16.mxu0 %v1659_v52 }
  0x71   : > { %1399 = vmatmul.mubr.msk.bf16.vlgmr.msra.gmra.mrb[8].mxu1 %vm513_vm1, %v429_v26  ;;  %1484 = vmatpush3.bf16.msra.mxu0 %v1661_v54 }
  0x72   : > { %630 = vmatprep.mubr.bf16.mxu1 %v1847_v0  ;;  %1500 = vmatpush3.bf16.msra.mxu1 %v1654_v48  ;;  %v1671_v0 = vld [vmem:[#allocation2 + $0xf0] sm:$0xff]  }
  0x73   : > { %1501 = vmatprep.subr.bf16.mxu1 %v1656_v49  ;;  %1485 = vmatprep.subr.bf16.mxu0 %v1663_v56 }
  0x75   : > { %1486 = vmatpush3.bf16.msra.mxu0 %v1665_v58 }
  0x76   : > { %1502 = vmatpush3.bf16.msra.mxu1 %v1658_v51  ;;  %1537 = vmatprep.subr.bf16.mxu0 %v1675_v8 }
  0x77   : > { %1503 = vmatprep.subr.bf16.mxu1 %v1660_v53 }
  0x79   : > { %1400 = vmatmul.mubr.msk.bf16.gmra.mrb[12].mxu1 %vm513_vm1, %v430_v41 }
  0x7a   : > { %1504 = vmatpush3.bf16.msra.mxu1 %v1662_v55 }
  0x7b   : > { %1505 = vmatprep.subr.bf16.mxu1 %v1664_v57 }
  0x7e   : > { %1506 = vmatpush3.bf16.msra.mxu1 %v1666_v59 }
  0x7f   : > { %1507 = vmatprep.subr.bf16.mxu1 %v1667_v60 }
  0x82   : > { %1508 = vmatpush3.bf16.msra.mxu1 %v1668_v61 }
  0x83   : > { %1509 = vmatprep.subr.bf16.mxu1 %v1669_v62 }
  0x86   : > { %1510 = vmatpush3.bf16.msra.mxu1 %v1670_v63 }
  0x87   : > { %1511 = vmatprep.subr.bf16.mxu1 %v1671_v0 }
  0x8a   : > { %1512 = vmatpush3.bf16.msra.mxu1 %v1672_v1 }
  0x8b   : > { %1513 = vmatprep.subr.bf16.mxu1 %v1673_v2 }
  0x8e   : > { %1514 = vmatpush3.bf16.msra.mxu1 %v1674_v3 }
 0x134   : > { %v569_v11 = vpop.f32.mrb[0].mxu1 }
 0x135   : > { %v570_v12 = vadd.f32 %v569_v11, %v446_v9  ;;  %v571_v13 = vpop.f32.mrb[1].mxu1  ;;  %v1678_v11 = vld [vmem:[#allocation5 + $0x18] sm:$0xff]  }
 0x136   : > { %v572_v14 = vadd.f32 %v571_v13, %v450_v10  ;;  %v573_v15 = vpop.f32.mrb[2].mxu1  ;;  %v1680_v13 = vld [vmem:[#allocation5 + $0x28] sm:$0xff]  }
 0x137   : > { %v574_v16 = vadd.f32 %v573_v15, %v446_v9  ;;  %v575_v17 = vpop.f32.mrb[3].mxu1  ;;  %v641_v19 = vmax.f32 %v570_v12, 0.0  ;;  %v1679_v12 = vld [vmem:[#allocation5 + $0x20] sm:$0xff]   ;;  %v1682_v15 = vld [vmem:[#allocation5 + $0x38] sm:$0xff]  }
 0x138   : > { %v576_v18 = vadd.f32 %v575_v17, %v450_v10  ;;  %v642_v21 = vmax.f32 %v572_v14, 0.0  ;;  %v1681_v14 = vld [vmem:[#allocation5 + $0x30] sm:$0xff]  }
 0x139   : > { %v645_v20 = vmax.f32 %v574_v16, 0.0 }
 0x13a   : > { %v646_v22 = vmax.f32 %v576_v18, 0.0 }
 0x13b   : > { %v657_v23 = vpack.c.bf16 %v645_v20, %v641_v19 }
 0x13c   : > { %v579_v24 = vpop.f32.mrb[4].mxu1  ;;  %v658_v25 = vpack.c.bf16 %v646_v22, %v642_v21 }
 0x13d   : > { %v580_v26 = vadd.f32 %v579_v24, %v446_v9  ;;  %v581_v27 = vpop.f32.mrb[5].mxu1 }
 0x13e   : > { %v582_v29 = vadd.f32 %v581_v27, %v450_v10  ;;  %v583_v30 = vpop.f32.mrb[6].mxu1  ;;  %960 = vmatprep.mubr.bf16.mxu0 %v658_v25 }
 0x13f   : > { %v584_v32 = vadd.f32 %v583_v30, %v446_v9  ;;  %v585_v33 = vpop.f32.mrb[7].mxu1  ;;  %961 = vmatmul.mubr.bf16.vlgmr.msra.gmra.mrb[0].mxu0 %v657_v23  ;;  %v649_v35 = vmax.f32 %v580_v26, 0.0  ;;  %v1676_v9 = vld [vmem:[#allocation5 + $0x8] sm:$0xff]  }
 0x140   : > { %v586_v34 = vadd.f32 %v585_v33, %v450_v10  ;;  %v650_v38 = vmax.f32 %v582_v29, 0.0  ;;  %1538 = vmatpush3.bf16.msra.mxu0 %v1675_v8  ;;  %v1677_v10 = vld [vmem:[#allocation5 + $0x10] sm:$0xff]  }
 0x141   : > { %v653_v36 = vmax.f32 %v584_v32, 0.0  ;;  %1539 = vmatprep.subr.bf16.mxu0 %v1676_v9 }
 0x142   : > { %v654_v39 = vmax.f32 %v586_v34, 0.0 }
 0x143   : > { %v661_v41 = vpack.c.bf16 %v653_v36, %v649_v35 }
 0x144   : > { %v662_v42 = vpack.c.bf16 %v654_v39, %v650_v38  ;;  %v622_v43 = vpop.f32.mrb[8].mxu1  ;;  %1540 = vmatpush3.bf16.msra.mxu0 %v1676_v9 }
 0x145   : > { %v623_v44 = vadd.f32 %v622_v43, %v454_v37  ;;  %v624_v45 = vpop.f32.mrb[9].mxu1  ;;  %1541 = vmatprep.subr.bf16.mxu0 %v1677_v10 }
 0x146   : > { %v625_v46 = vadd.f32 %v624_v45, %v458_v40  ;;  %v626_v47 = vpop.f32.mrb[10].mxu1  ;;  %968 = vmatprep.mubr.bf16.mxu0 %v662_v42 }
 0x147   : > { %v627_v48 = vadd.f32 %v626_v47, %v454_v37  ;;  %v628_v49 = vpop.f32.mrb[11].mxu1  ;;  %969 = vmatmul.mubr.bf16.gmra.mrb[4].mxu0 %v661_v41  ;;  %v643_v51 = vmax.f32 %v623_v44, 0.0 }
 0x148   : > { %v629_v50 = vadd.f32 %v628_v49, %v458_v40  ;;  %v644_v53 = vmax.f32 %v625_v46, 0.0  ;;  %1542 = vmatpush3.bf16.msra.mxu0 %v1677_v10 }
 0x149   : > { %v647_v52 = vmax.f32 %v627_v48, 0.0  ;;  %1543 = vmatprep.subr.bf16.mxu0 %v1678_v11 }
 0x14a   : > { %v648_v54 = vmax.f32 %v629_v50, 0.0 }
 0x14b   : > { %v659_v55 = vpack.c.bf16 %v647_v52, %v643_v51 }
 0x14c   : > { %v660_v56 = vpack.c.bf16 %v648_v54, %v644_v53  ;;  %v632_v57 = vpop.f32.mrb[12].mxu1  ;;  %1544 = vmatpush3.bf16.msra.mxu0 %v1678_v11 }
 0x14d   : > { %v633_v58 = vadd.f32 %v632_v57, %v454_v37  ;;  %v634_v59 = vpop.f32.mrb[13].mxu1  ;;  %1545 = vmatprep.subr.bf16.mxu0 %v1679_v12  ;;  %v1175_v57 = vadd.s32 8, %v2076_v5 }
 0x14e   : > { %v635_v60 = vadd.f32 %v634_v59, %v458_v40  ;;  %v636_v61 = vpop.f32.mrb[14].mxu1  ;;  %1009 = vmatprep.mubr.bf16.mxu1 %v660_v56  ;;  %v1176_v56 = vadd.s32 16, %v2076_v5  ;;  %v1177_v59 = vadd.s32 24, %v2076_v5 }
 0x14f   : > { %v637_v62 = vadd.f32 %v636_v61, %v454_v37  ;;  %v638_v63 = vpop.f32.mrb[15].mxu1  ;;  %1010 = vmatmul.mubr.bf16.vlgmr.msra.gmra.mrb[16].mxu1 %v659_v55  ;;  %v651_v1 = vmax.f32 %v633_v58, 0.0  ;;  %v1178_v55 = vstv %s1447_s30 }
 0x150   : > { %v639_v0 = vadd.f32 %v638_v63, %v458_v40  ;;  %v652_v3 = vmax.f32 %v635_v60, 0.0  ;;  %1546 = vmatpush3.bf16.msra.mxu0 %v1679_v12  ;;  %v1179_v58 = vadd.s32 %v1178_v55, %v2076_v5  ;;  %v1434_v60 = vld [vmem:[%s2191_s8] ss:$0 sm:$0xff]  ;;  %v1181_v61 = vadd.s32 %v1178_v55, %v1176_v56 }
 0x151   : > { %v655_v2 = vmax.f32 %v637_v62, 0.0  ;;  %1547 = vmatprep.subr.bf16.mxu0 %v1680_v13  ;;  %v1180_v62 = vadd.s32 %v1178_v55, %v1175_v57 }
 0x152   : > { %v656_v4 = vmax.f32 %v639_v0, 0.0  ;;  %vm1183_vm2 = vcmp.lt.s32.totalorder %v1179_v58, 60  ;;  %vm1185_vm3 = vcmp.lt.s32.totalorder %v1181_v61, 60 }
 0x153   : > { %v663_v6 = vpack.c.bf16 %v655_v2, %v651_v1  ;;  %v1182_v1 = vadd.s32 %v1178_v55, %v1177_v59  ;;  %vm1184_vm4 = vcmp.lt.s32.totalorder %v1180_v62, 60 }
 0x154   : > { %v664_v7 = vpack.c.bf16 %v656_v4, %v652_v3  ;;  %1548 = vmatpush3.bf16.msra.mxu0 %v1680_v13 }
 0x155   : > { %1549 = vmatprep.subr.bf16.mxu0 %v1681_v14  ;;  %vm1186_vm5 = vcmp.lt.s32.totalorder %v1182_v1, 60 }
 0x156   : > { %1017 = vmatprep.mubr.bf16.mxu1 %v664_v7 }
 0x157   : > { %1018 = vmatmul.mubr.bf16.gmra.mrb[20].mxu1 %v663_v6 }
 0x158   : > { %1550 = vmatpush3.bf16.msra.mxu0 %v1681_v14 }
 0x159   : > { %1551 = vmatprep.subr.bf16.mxu0 %v1682_v15 }
 0x15c   : > { %1552 = vmatpush3.bf16.msra.mxu0 %v1682_v15 }
 0x212   : > { %v1487_v16 = vpop.f32.mrb[0].mxu0 }
 0x213   : > { %v1488_v17 = vpop.f32.mrb[1].mxu0 }
 0x214   : > { %v1489_v18 = vadd.f32 %v1488_v17, %v1487_v16  ;;  %v1490_v19 = vpop.f32.mrb[2].mxu0 }
 0x215   : > { %v1491_v20 = vpop.f32.mrb[3].mxu0 }
 0x216   : > { %v1492_v21 = vadd.f32 %v1491_v20, %v1490_v19  ;;  %v963_v31 = vadd.f32 %v1489_v18, %v1401_v28 }
 0x218   : > { %v966_v35 = vadd.f32 %v1492_v21, %v1401_v28 }
 0x21a   : > { %v1493_v22 = vpop.f32.mrb[4].mxu0 }
 0x21b   : > { %v1494_v23 = vpop.f32.mrb[5].mxu0 }
 0x21c   : > { %v1495_v24 = vadd.f32 %v1494_v23, %v1493_v22  ;;  %v1496_v25 = vpop.f32.mrb[6].mxu0 }
 0x21d   : > { %v1497_v26 = vpop.f32.mrb[7].mxu0 }
 0x21e   : > { %v1498_v27 = vadd.f32 %v1497_v26, %v1496_v25  ;;  %v971_v43 = vadd.f32 %v1495_v24, %v1401_v28 }
 0x220   : > { %v974_v48 = vadd.f32 %v1498_v27, %v1401_v28 }
 0x222   : > { %v1515_v29 = vpop.f32.mrb[16].mxu1 }
 0x223   : > { %v1516_v30 = vpop.f32.mrb[17].mxu1 }
 0x224   : > { %v1517_v32 = vadd.f32 %v1516_v30, %v1515_v29  ;;  %v1518_v33 = vpop.f32.mrb[18].mxu1 }
 0x225   : > { %v1519_v34 = vpop.f32.mrb[19].mxu1 }
 0x226   : > { %v1012_v36 = vadd.f32 %v1517_v32, %v963_v31  ;;  %v1520_v37 = vadd.f32 %v1519_v34, %v1518_v33 }
 0x228   : > { %v1015_v38 = vadd.f32 %v1520_v37, %v966_v35  ;;  %v1026_v39 = vmax.f32 %v1012_v36, 0.0 }
 0x22a   : > { %v1027_v40 = vmax.f32 %v1015_v38, 0.0  ;;  %v1521_v41 = vpop.f32.mrb[20].mxu1 }
 0x22b   : > { %v1522_v42 = vpop.f32.mrb[21].mxu1 }
 0x22c   : > { %v1523_v44 = vadd.f32 %v1522_v42, %v1521_v41  ;;  %v1524_v45 = vpop.f32.mrb[22].mxu1  ;;  %v1030_v46 = vpack.c.bf16 %v1027_v40, %v1026_v39 }
 0x22d   : > { %v1525_v47 = vpop.f32.mrb[23].mxu1 }
 0x22e   : > { %v1020_v49 = vadd.f32 %v1523_v44, %v971_v43  ;;  %v1526_v50 = vadd.f32 %v1525_v47, %v1524_v45  ;;  %1553 = vmatprep.mubr.bf16.mxu0 %v1030_v46 }
 0x230   : > { %v1023_v51 = vadd.f32 %v1526_v50, %v974_v48  ;;  %v1028_v52 = vmax.f32 %v1020_v49, 0.0 }
 0x232   : > { %v1029_v53 = vmax.f32 %v1023_v51, 0.0 }
 0x234   : > { %v1031_v54 = vpack.c.bf16 %v1029_v53, %v1028_v52 }
 0x236   : > { %1554 = vmatmul.mubr.bf16.vlgmr.msra.gmra.mrb[8].mxu0 %v1031_v54 }
 0x309   : > { %v1555_v63 = vpop.f32.mrb[8].mxu0 }
 0x30a   : > { %v1137_v0 = vpop.f32.mrb[9].mxu0  ;;  %v1146_v2 = vadd.f32 %v1555_v63, %v1434_v60 }
 0x30b   : > { %v1138_v3 = vadd.f32 %v1434_v60, %v1137_v0  ;;  %v1556_v4 = vpop.f32.mrb[10].mxu0 }
 0x30c   : > { %v1149_v6 = vadd.f32 %v1556_v4, %v1434_v60  ;;  %v1140_v7 = vpop.f32.mrb[11].mxu0  ;;  %v1197_v10 = vsel %vm1185_vm3, %v1146_v2, 0.0 }
 0x30d   : > { %v1195_v5 = vsel %vm1183_vm2, %v1138_v3, 0.0  ;;  %v1141_v8 = vadd.f32 %v1434_v60, %v1140_v7  ;;  %v1211_v17 = vmul.f32 %v1197_v10, %v1197_v10 }
 0x30e   : > { %v1468_v9 = vpack.c.bf16 %v1149_v6, %v1146_v2  ;;  %v1209_v13 = vmul.f32 %v1195_v5, %v1195_v5  ;;  %v1198_v16 = vsel %vm1186_vm5, %v1149_v6, 0.0 }
 0x30f   : > { %v1463_v11 = vpack.c.bf16 %v1141_v8, %v1138_v3  ;;  %v1196_v12 = vsel %vm1184_vm4, %v1141_v8, 0.0 }
 0x310   : > { %1470 = vst [vmem:[%s387_s21 + $0x8] sm:$0xff] %v1468_v9   ;;  %v1199_v14 = vadd.f32 %v1196_v12, %v1195_v5  ;;  %v1210_v15 = vmul.f32 %v1196_v12, %v1196_v12 }
 0x311   : > { %1464 = vst [vmem:[%s387_s21] sm:$0xff] %v1463_v11  }
 0x312   : > { %v1200_v18 = vadd.f32 %v1199_v14, %v1197_v10  ;;  %v1213_v19 = vadd.f32 %v1210_v15, %v1209_v13 }
 0x313   : > { %1752 = shalt.err (!%p1749_p11)
}
 0x314   : > { %s1753_s18 = scalar_lea.hbm %s2108_s15, 256  ;;  %s1757_s29 = scalar_lea.hbm %s2192_s9, 512 }
 0x315   : > { %p1754_p13 = scmp.ne.s32.totalorder %s2108_s15, %s1753_s18  ;;  %p1758_p6 = scmp.lt.u32.totalorder %s2108_s15, %s2192_s9 }
 0x316   : > { %p1759_p9 = scmp.lt.u32.totalorder %s1757_s29, %s1753_s18  ;;  %p1761_p10 = scmp.lt.u32.totalorder %s1753_s18, %s2108_s15 }
 0x317   : > { %p1755_p5 = pnand %p1754_p13, %p2214_p1 }
 0x318   : > { %p1760_p12 = por %p1759_p9, %p1758_p6 }
 0x319   : > { %p1756_p0 = pneg %p1755_p5 }
 0x31a   : > { %p1762_p2 = por %p1761_p10, %p1760_p12 }
 0x31c   : > { %p1763_p3 = pnand %p1762_p2, %p1756_p0 }
 0x31e   : > { %1766 = shalt.err (!%p1763_p3)
}
 0x31f   : > { %s1849_s24 = smov 64   ;;  %s1850_s25 = smov 4   ;;  %v1212_v20 = vmul.f32 %v1198_v16, %v1198_v16  ;;  %v1201_v21 = vadd.f32 %v1200_v18, %v1198_v16  ;;  %v1214_v22 = vadd.f32 %v1213_v19, %v1211_v17 }
 0x320   : > { %1565 = dma.vmem_to_hbm [thread:$0]  (%p2214_p1), %s2103_s26, 256, %s2108_s15, %s1224_s19, %s1849_s24, %s1849_s24, %s1850_s25  }
 0x321   : > { %v1202_v23 = vrot.slane %v1201_v21, 4  ;;  %v1215_v24 = vadd.f32 %v1214_v22, %v1212_v20  ;;  %s1380_s28 = sshll.u32 %s2092_s11, 1  ;;  %s2140_s19 = scalar_lea.hbm %s2193_s10, %s1447_s30 }
 0x322   : > { %s394_s12 = scalar_lea.vmem [#allocation8], %s1380_s28  ;;  %s1229_s20 = scalar_lea.sflag [#allocation9], %s2092_s11 }
 0x323   : > { %v1203_v25 = vadd.f32 %v1202_v23, %v1201_v21  ;;  %v1216_v26 = vrot.slane %v1215_v24, 4  ;;  %s1258_s18 = sshll.u32 %s394_s12, 4  ;;  %s1851_s29 = smov [#allocation8]   ;;  %s2142_s18 = int_to_ptr.vmem [resolvable:$true] %s1258_s18 }
 0x324   : > { %s1767_s21 = scalar_lea.vmem %s2142_s18, 32  ;;  %s1771_s22 = sshll.u32 %s1851_s29, 4  ;;  %s1772_s22 = int_to_ptr.vmem [resolvable:$false] %s1771_s22 }
 0x325   : > { %v1204_v27 = vrot.slane %v1203_v25, 2  ;;  %v1217_v28 = vadd.f32 %v1216_v26, %v1215_v24  ;;  %p1768_p4 = scmp.ne.s32.totalorder %s2142_s18, %s1767_s21  ;;  %s1773_s17 = scalar_lea.vmem %s1772_s22, 64 }
 0x326   : > { %p1774_p11 = scmp.lt.s32.totalorder %s2142_s18, %s1772_s22  ;;  %p1775_p13 = scmp.lt.s32.totalorder %s1773_s17, %s1767_s21 }
 0x327   : > { %v1205_v29 = vadd.f32 %v1204_v27, %v1203_v25  ;;  %v1218_v30 = vrot.slane %v1217_v28, 2  ;;  %p1769_p7 = pnand %p1768_p4, %p2214_p1 }
 0x328   : > { %p1776_p5 = por %p1775_p13, %p1774_p11 }
 0x329   : > { %v1206_v31 = vrot.slane %v1205_v29, 1  ;;  %v1219_v32 = vadd.f32 %v1218_v30, %v1217_v28  ;;  %p1770_p8 = pneg %p1769_p7 }
 0x32b   : > { %v1207_v33 = vadd.f32 %v1206_v31, %v1205_v29  ;;  %v1220_v34 = vrot.slane %v1219_v32, 1  ;;  %p1777_p0 = pnand %p1776_p5, %p1770_p8 }
 0x32d   : > { %1208 = vst [vmem:[%s394_s12] sm:$0x1] %v1207_v33  ;;  %v1221_v35 = vadd.f32 %v1220_v34, %v1219_v32 }
 0x32f   : > { %1222 = vst [vmem:[%s394_s12 + $0x1] sm:$0x1] %v1221_v35 }
 0x330   : > { %1780 = shalt.err (!%p1777_p0)
}
 0x331   : > { %s1781_s30 = scalar_lea.hbm %s2140_s19, 32  ;;  %s1785_s24 = scalar_lea.hbm %s2193_s10, 64 }
 0x332   : > { %p1782_p6 = scmp.ne.s32.totalorder %s2140_s19, %s1781_s30  ;;  %p1786_p10 = scmp.lt.u32.totalorder %s2140_s19, %s2193_s10 }
 0x333   : > { %p1787_p2 = scmp.lt.u32.totalorder %s1785_s24, %s1781_s30  ;;  %p1789_p4 = scmp.lt.u32.totalorder %s1781_s30, %s2140_s19 }
 0x334   : > { %p1783_p9 = pnand %p1782_p6, %p2214_p1 }
 0x335   : > { %p1788_p3 = por %p1787_p2, %p1786_p10 }
 0x336   : > { %p1784_p12 = pneg %p1783_p9 }
 0x337   : > { %p1790_p7 = por %p1789_p4, %p1788_p3 }
 0x339   : > { %p1791_p8 = pnand %p1790_p7, %p1784_p12 }
 0x33b   : > { %1794 = shalt.err (!%p1791_p8)
}
 0x33c   : > { %1566 = dma.vmem_to_hbm [thread:$0]  (%p2214_p1), %s2142_s18, 32, %s2140_s19, %s1229_s20  }
 0x33d PF: > { %s2215_s12 = sld [smem:[#allocation17_spill]]  ;;  %p1587_p11 = scmp.ge.s32.totalorder %s1841_s16, 2 }
 0x33e   : > { %s1270_s26 = sand.u32 1, %s1829_s13  }
 0x33f   : > { %s1271_s15 = scalar_lea.sflag [#allocation4], %s1270_s26 }
 0x343   : > { %p2216_p13 = scmp.ne.s32.totalorder %s2215_s12, 0 }
 0x345   : > { %p1577_p5 = pnand %p1587_p11, %p2216_p13 }
 0x347   : > { %1820 = dma.done.wait (!%p1577_p5), %s1271_s15, 256  }
 0x348   : > { %1822 = vsyncadd (!%p1577_p5), %s1271_s15, 4294967040  ;;  %s1280_s21 = scalar_lea.sflag [#allocation9], %s1270_s26 }
 0x349   : > { %1824 = dma.done.wait (!%p1577_p5), %s1280_s21, 32  }
 0x34a   : > { %1826 = vsyncadd (!%p1577_p5), %s1280_s21, 4294967264  ;;  %s2217_s16 = sld [smem:[#allocation15_spill]]  ;;  %s2218_s23 = sld [smem:[#allocation14_spill]] }
 0x34b   : > { %s2219_s15 = sld [smem:[#allocation16_spill]]  ;;  %s2220_s13 = smov %s1833_s14 }
 0x350   : > { %p26_p1 = scmp.ge.s32.totalorder %s2217_s16, 4   ;;  %s2221_s14 = smov %s2218_s23 }
 0x352   :  { %28 = sbr.rel (!%p26_p1) target bundleno = 7 (0x7), region = 117 }
 0x359   :  { %1285 = vsyncpa [#allocation3], 1 }
 0x35a   :  { %1287 = vsyncpa [#allocation3 + $0x1], 1 }
 0x35b   :  { %1288 = vsyncpa [#allocation6], 1 }
 0x35c   :  { %1289 = vsyncpa [#allocation4], 1 }
 0x35d   :  { %1291 = vsyncpa [#allocation4 + $0x1], 1 }
 0x35e   :  { %1292 = vsyncpa [#allocation9], 1 }
 0x35f   :  { %1294 = vsyncpa [#allocation9 + $0x1], 1 }

</bundles_post_ra>
